<compile_context>
chip_gen: v6e
topology: v6e:2x2x1
jax: 0.10.0
libtpu: 0.0.40
codegen_flags: <defaults>
</compile_context>

<pallas_src>
import functools

import jax
import jax.numpy as jnp
from jax.experimental import pallas as pl
from jax.experimental.pallas import tpu as pltpu


def _round_up(a, b):
    return (a + b - 1) // b * b


def _vmem_capacity_bytes():
    try:
        info = pltpu.get_tpu_info()
        return int(getattr(info, "vmem_capacity_bytes", 64 << 20))
    except Exception:
        return 64 << 20  # conservative (v7x-sized) fallback


def _pick_hw_tile(hw, cin, c4, itemsize=4):
    """Largest lane tile (multiple of 128) whose double-buffered in+out streams fit
    a fraction of this device's VMEM (re-derived per generation, so v7x's 64 MiB is ok)."""
    budget = _vmem_capacity_bytes() // 4
    per_lane = 2 * (cin + c4) * itemsize          # 2 buffers x (x-tile + out-tile) per lane
    t = max(128, (budget // per_lane) // 128 * 128)
    t = min(t, _round_up(hw, 128), 8192)
    return int(t)


def _deconv2x2_bn_relu_kernel(x_ref, w_ref, shift_ref, o_ref):
    # x_ref:     (1, Cin, T)      pixel tile of one image, channels on sublanes
    # w_ref:     (4*Cout, Cin)    BN-scale-folded weight, rows ordered (kh, kw, co)
    # shift_ref: (4*Cout, 1)      folded BN shift
    # o_ref:     (1, 4*Cout, T)   tap-major output tile (lane-dense)
    x = x_ref[0]                  # (Cin, T)
    w = w_ref[...]                # (C4, Cin)
    cin = x.shape[0]
    if cin <= 16:
        # Tiny channel count: unrolled VPU multiply-add (keeps us on the vld/vst roofline).
        y = w[:, 0:1] * x[0:1, :]
        for ci in range(1, cin):
            y = y + w[:, ci:ci + 1] * x[ci:ci + 1, :]
    else:
        # General fallback: MXU matmul.
        y = jnp.dot(w, x, preferred_element_type=jnp.float32)
    y = y + shift_ref[...]
    o_ref[0] = jnp.maximum(y, 0.0).astype(o_ref.dtype)


def trans_basic_conv2d(x, weight, gamma, beta, running_mean, running_var, eps=1e-5):
    """x: (N, Cin, H, W) f32. weight: (Cin, Cout, 2, 2) (PyTorch ConvTranspose2d layout).
    Returns relu(bn(conv_transpose2d(x, weight, stride=2))) of shape (N, Cout, 2H, 2W).
    BatchNorm is evaluated in inference mode with its running statistics."""
    N, Cin, H, W = x.shape
    Cin_w, Cout, KH, KW = weight.shape
    assert Cin_w == Cin and (KH, KW) == (2, 2)
    C4 = 4 * Cout
    HW = H * W

    # Fold eval-mode BN into the weight (scale) and a per-row shift (conv bias=False).
    scale = gamma * jax.lax.rsqrt(running_var + eps)          # (Cout,)
    shift = beta - running_mean * scale                       # (Cout,)

    # (Cin, Cout, 2, 2) -> (kh, kw, Cout, Cin) -> (4*Cout, Cin), BN scale folded in.
    w4 = jnp.transpose(weight, (2, 3, 1, 0)).reshape(C4, Cin).astype(jnp.float32)
    w4 = w4 * jnp.tile(scale, 4)[:, None]
    shift4 = jnp.tile(shift, 4).reshape(C4, 1).astype(jnp.float32)

    # Channel-major slab: NCHW is already (N, Cin, H*W) — pure reshape, no transpose.
    x3 = x.reshape(N, Cin, HW).astype(jnp.float32)

    t = _pick_hw_tile(HW, Cin, C4)
    hwp = _round_up(HW, t)
    if hwp != HW:                                             # ragged H*W: pad, slice later
        x3 = jnp.pad(x3, ((0, 0), (0, 0), (0, hwp - HW)))
    grid = (N, hwp // t)

    # VMEM needed per step (double-buffered x + out tiles, plus resident weight/shift).
    need = 2 * (Cin + C4) * t * 4 + C4 * (Cin + 1) * 4
    vmem_limit = int(max(2 * need + (1 << 20), 8 << 20))

    y = pl.pallas_call(
        _deconv2x2_bn_relu_kernel,
        out_shape=jax.ShapeDtypeStruct((N, C4, hwp), jnp.float32),
        grid_spec=pltpu.PrefetchScalarGridSpec(
            num_scalar_prefetch=0,
            grid=grid,
            in_specs=[
                pl.BlockSpec((1, Cin, t), lambda n, j: (n, 0, j)),   # pixel tile
                pl.BlockSpec((C4, Cin), lambda n, j: (0, 0)),        # folded weight
                pl.BlockSpec((C4, 1), lambda n, j: (0, 0)),          # folded shift
            ],
            out_specs=pl.BlockSpec((1, C4, t), lambda n, j: (n, 0, j)),
        ),
        compiler_params=pltpu.CompilerParams(
            dimension_semantics=("parallel", "parallel"),
            vmem_limit_bytes=vmem_limit),
    )(x3, w4, shift4)

    if hwp != HW:
        y = y[:, :, :HW]

    # Depth-to-space: (N, kh, kw, Cout, H, W) -> (N, Cout, 2H, 2W),
    # out[n, co, 2h+kh, 2w+kw] = y[n, kh, kw, co, h, w].
    y = y.reshape(N, 2, 2, Cout, H, W)
    y = jnp.transpose(y, (0, 3, 4, 1, 5, 2)).reshape(N, Cout, 2 * H, 2 * W)
    return y


if __name__ == "__main__":
    # Small shapes consistent with the module: batch=2, in_planes=4, out_planes=8, 16x16.
    N, Cin, Cout, H, W = 2, 4, 8, 16, 16
    eps = 1e-5

    key = jax.random.PRNGKey(0)
    kx, kw, kg, kb, km, kv = jax.random.split(key, 6)

    x = jax.random.normal(kx, (N, Cin, H, W), dtype=jnp.float32)
    # ConvTranspose2d(Cin, Cout, 2, stride=2, bias=False) weight: (Cin, Cout, 2, 2).
    weight = jax.random.normal(kw, (Cin, Cout, 2, 2), dtype=jnp.float32) * 0.1
    gamma = 1.0 + 0.1 * jax.random.normal(kg, (Cout,), dtype=jnp.float32)
    beta = 0.1 * jax.random.normal(kb, (Cout,), dtype=jnp.float32)
    running_mean = 0.1 * jax.random.normal(km, (Cout,), dtype=jnp.float32)
    running_var = jnp.abs(1.0 + 0.1 * jax.random.normal(kv, (Cout,), dtype=jnp.float32))

    fwd = jax.jit(functools.partial(trans_basic_conv2d, eps=eps))
    out = fwd(x, weight, gamma, beta, running_mean, running_var)
    out = jax.block_until_ready(out)

    # Independent reference: ConvTranspose2d == dilated conv with spatially-flipped,
    # channel-swapped kernel; then eval-mode BN + ReLU.
    w_flip = jnp.transpose(weight, (1, 0, 2, 3))[:, :, ::-1, ::-1]   # (Cout, Cin, 2, 2)
    conv_ref = jax.lax.conv_general_dilated(
        x, w_flip, window_strides=(1, 1), padding=((1, 1), (1, 1)),
        lhs_dilation=(2, 2), dimension_numbers=("NCHW", "OIHW", "NCHW"),
        precision=jax.lax.Precision.HIGHEST)
    bn_ref = (conv_ref - running_mean[None, :, None, None]) / jnp.sqrt(
        running_var[None, :, None, None] + eps) * gamma[None, :, None, None] \
        + beta[None, :, None, None]
    ref = jnp.maximum(bn_ref, 0.0)

    assert out.shape == (N, Cout, 2 * H, 2 * W)
    err = float(jnp.max(jnp.abs(out - ref)))
    assert jnp.allclose(out, ref, atol=1e-4, rtol=1e-4), f"mismatch vs reference: {err}"
    print("KERNEL_OK")
</pallas_src>

<mosaic_0001>
module attributes {stable_mosaic.version = 11 : i64} {
  func.func @_deconv2x2_bn_relu_kernel(%arg0: i32, %arg1: i32, %arg2: memref<1x4x256xf32, #tpu.memory_space<vmem>>, %arg3: memref<32x4xf32, #tpu.memory_space<vmem>>, %arg4: memref<32x1xf32, #tpu.memory_space<vmem>>, %arg5: memref<1x32x256xf32, #tpu.memory_space<vmem>>) attributes {dimension_semantics = [#tpu.dimension_semantics<parallel>, #tpu.dimension_semantics<parallel>], iteration_bounds = array<i64: 2, 1>, scalar_prefetch = 0 : i64, scratch_operands = 0 : i64, tpu.core_type = #tpu.core_type<tc>, window_params = [{transform_indices = @transform_0, window_bounds = array<i64: 1, 4, 256>}, {pipeline_mode = #tpu.pipeline_mode<synchronous>, transform_indices = @transform_1, window_bounds = array<i64: 32, 4>}, {pipeline_mode = #tpu.pipeline_mode<synchronous>, transform_indices = @transform_2, window_bounds = array<i64: 32, 1>}, {transform_indices = @transform_3, window_bounds = array<i64: 1, 32, 256>}]} {
    %c0 = arith.constant 0 : index
    %c0_0 = arith.constant 0 : index
    %c0_1 = arith.constant 0 : index
    %0 = vector.load %arg2[%c0, %c0_0, %c0_1] : memref<1x4x256xf32, #tpu.memory_space<vmem>>, vector<1x4x256xf32>
    %1 = vector.shape_cast %0 : vector<1x4x256xf32> to vector<4x256xf32>
    %c0_2 = arith.constant 0 : index
    %c0_3 = arith.constant 0 : index
    %2 = vector.load %arg3[%c0_2, %c0_3] : memref<32x4xf32, #tpu.memory_space<vmem>>, vector<32x4xf32>
    %3 = vector.extract_strided_slice %2 {offsets = [0, 0], sizes = [32, 1], strides = [1, 1]} : vector<32x4xf32> to vector<32x1xf32>
    %4 = vector.extract_strided_slice %1 {offsets = [0, 0], sizes = [1, 256], strides = [1, 1]} : vector<4x256xf32> to vector<1x256xf32>
    %5 = vector.broadcast %3 : vector<32x1xf32> to vector<32x256xf32>
    %6 = vector.broadcast %4 : vector<1x256xf32> to vector<32x256xf32>
    %7 = arith.mulf %5, %6 : vector<32x256xf32>
    %8 = vector.extract_strided_slice %2 {offsets = [0, 1], sizes = [32, 1], strides = [1, 1]} : vector<32x4xf32> to vector<32x1xf32>
    %9 = vector.extract_strided_slice %1 {offsets = [1, 0], sizes = [1, 256], strides = [1, 1]} : vector<4x256xf32> to vector<1x256xf32>
    %10 = vector.broadcast %8 : vector<32x1xf32> to vector<32x256xf32>
    %11 = vector.broadcast %9 : vector<1x256xf32> to vector<32x256xf32>
    %12 = arith.mulf %10, %11 : vector<32x256xf32>
    %13 = arith.addf %7, %12 : vector<32x256xf32>
    %14 = vector.extract_strided_slice %2 {offsets = [0, 2], sizes = [32, 1], strides = [1, 1]} : vector<32x4xf32> to vector<32x1xf32>
    %15 = vector.extract_strided_slice %1 {offsets = [2, 0], sizes = [1, 256], strides = [1, 1]} : vector<4x256xf32> to vector<1x256xf32>
    %16 = vector.broadcast %14 : vector<32x1xf32> to vector<32x256xf32>
    %17 = vector.broadcast %15 : vector<1x256xf32> to vector<32x256xf32>
    %18 = arith.mulf %16, %17 : vector<32x256xf32>
    %19 = arith.addf %13, %18 : vector<32x256xf32>
    %20 = vector.extract_strided_slice %2 {offsets = [0, 3], sizes = [32, 1], strides = [1, 1]} : vector<32x4xf32> to vector<32x1xf32>
    %21 = vector.extract_strided_slice %1 {offsets = [3, 0], sizes = [1, 256], strides = [1, 1]} : vector<4x256xf32> to vector<1x256xf32>
    %22 = vector.broadcast %20 : vector<32x1xf32> to vector<32x256xf32>
    %23 = vector.broadcast %21 : vector<1x256xf32> to vector<32x256xf32>
    %24 = arith.mulf %22, %23 : vector<32x256xf32>
    %25 = arith.addf %19, %24 : vector<32x256xf32>
    %c0_4 = arith.constant 0 : index
    %c0_5 = arith.constant 0 : index
    %26 = vector.load %arg4[%c0_4, %c0_5] : memref<32x1xf32, #tpu.memory_space<vmem>>, vector<32x1xf32>
    %27 = vector.broadcast %26 : vector<32x1xf32> to vector<32x256xf32>
    %28 = arith.addf %25, %27 : vector<32x256xf32>
    %cst = arith.constant 0.000000e+00 : f32
    %29 = vector.broadcast %cst : f32 to vector<32x256xf32>
    %30 = arith.maximumf %28, %29 : vector<32x256xf32>
    %c0_6 = arith.constant 0 : index
    %c0_7 = arith.constant 0 : index
    %c0_8 = arith.constant 0 : index
    %31 = vector.load %arg5[%c0_6, %c0_7, %c0_8] : memref<1x32x256xf32, #tpu.memory_space<vmem>>, vector<1x32x256xf32>
    %32 = vector.shape_cast %31 : vector<1x32x256xf32> to vector<32x256xf32>
    %33 = vector.shape_cast %30 : vector<32x256xf32> to vector<1x32x256xf32>
    tpu.vector_store %arg5[%c0_6, %c0_7, %c0_8], %33 {strides = array<i32>} : memref<1x32x256xf32, #tpu.memory_space<vmem>>, vector<1x32x256xf32>,
    return
  }
  func.func @transform_0(%arg0: i32, %arg1: i32) -> (i32, i32, i32) {
    %c0_i32 = arith.constant 0 : i32
    %c0_i32_0 = arith.constant 0 : i32
    return %arg0, %c0_i32, %arg1 : i32, i32, i32
  }
  func.func @transform_1(%arg0: i32, %arg1: i32) -> (i32, i32) {
    %c0_i32 = arith.constant 0 : i32
    %c0_i32_0 = arith.constant 0 : i32
    %c0_i32_1 = arith.constant 0 : i32
    return %c0_i32, %c0_i32_0 : i32, i32
  }
  func.func @transform_2(%arg0: i32, %arg1: i32) -> (i32, i32) {
    %c0_i32 = arith.constant 0 : i32
    %c0_i32_0 = arith.constant 0 : i32
    %c0_i32_1 = arith.constant 0 : i32
    return %c0_i32, %c0_i32_0 : i32, i32
  }
  func.func @transform_3(%arg0: i32, %arg1: i32) -> (i32, i32, i32) {
    %c0_i32 = arith.constant 0 : i32
    %c0_i32_0 = arith.constant 0 : i32
    return %arg0, %c0_i32, %arg1 : i32, i32, i32
  }
}

</mosaic_0001>

<bundles_post_ra>
// kernel: mul.9
= control target key start
LH: loop header
LB: loop body
LE: loop exit
PB: predicated region body
PF: predicated region fallthrough
CT: control target
= control target key end

     0   :  { %vm8_vm0 = vcmask 64512   ;;  %s40_s8 = smov 8   ;;  %s41_s9 = smov 16   ;;  %vm14_vm1 = vcmask 261312   ;;  %vm20_vm2 = vcmask 195712   ;;  %vm26_vm3 = vcmask 130112   ;;  %s58_s0 = inlined_call_operand.vmem [shape: f32[4,8], index: 0, kind: input, shape index: {}]   ;;  %s59_s1 = inlined_call_operand.vmem [shape: f32[32], index: 1, kind: output, shape index: {}]  }
   0x1   :  { %v5_v0 = vld [vmem:[%s58_s0] sm:$0xf]  ;;  %s39_s0 = smov 24  }
   0x2   :  { %6 = vst [vmem:[#allocation1] sm:$0xf] %v5_v0 }
   0x9   :  { %v11_v1 = vld [vmem:[#allocation1 + $0x3] sm:$0x1]   ;;  %v23_v2 = vld [vmem:[#allocation1 + $0x1] sm:$0x1]   ;;  %v7_v3 = vld [vmem:[#allocation1] sm:$0x1]  }
   0xa   :  { %12 = vrot.lane.b32.xlu0 %v11_v1, %s39_s0  ;;  %24 = vrot.lane.b32.xlu1 %v23_v2, %s40_s8  ;;  %v17_v4 = vld [vmem:[#allocation1 + $0x2] sm:$0x1]   ;;  %9 = vst.msk [vmem:[#allocation0] sm:$0x1] %vm8_vm0, %v7_v3  }
   0xe   :  { %18 = vrot.lane.b32.xlu0 %v17_v4, %s41_s9 }
  0x7c   :  { %v13_v5 = vpop.permute.xlu0 %12   ;;  %v25_v6 = vpop.permute.xlu1 %24  }
  0x7d   :  { %15 = vst.msk [vmem:[#allocation0] sm:$0x1] %vm14_vm1, %v13_v5  }
  0x80   :  { %v19_v7 = vpop.permute.xlu0 %18  }
  0x81   :  { %21 = vst.msk [vmem:[#allocation0] sm:$0x1] %vm20_vm2, %v19_v7  }
  0x82   :  { %27 = vst.msk [vmem:[#allocation0] sm:$0x1] %vm26_vm3, %v25_v6  }
  0x89   :  { %v32_v8 = vld [vmem:[#allocation0] sm:$0x1] }
  0x8a   :  { %35 = vst [vmem:[%s59_s1] sm:$0x1] %v32_v8 }

// kernel: tile.18
= control target key start
LH: loop header
LB: loop body
LE: loop exit
PB: predicated region body
PF: predicated region fallthrough
CT: control target
= control target key end

     0   :  { %s22_s0 = inlined_call_operand.vmem [shape: f32[8], index: 0, kind: input, shape index: {}]   ;;  %s23_s1 = inlined_call_operand.vmem [shape: f32[4,8], index: 1, kind: output, shape index: {}]  }
   0x1   :  { %v4_v0 = vld [vmem:[%s22_s0] ss:$0 sm:$0xff] }
   0x2   :  { %5 = vst [vmem:[%s23_s1] sm:$0xf] %v4_v0 }

// kernel: tile.0
= control target key start
LH: loop header
LB: loop body
LE: loop exit
PB: predicated region body
PF: predicated region fallthrough
CT: control target
= control target key end

     0   :  { %s67_s8 = smov 125   ;;  %vm8_vm0 = vcmask 7168   ;;  %s68_s11 = smov 126   ;;  %s118_s0 = inlined_call_operand.vmem [shape: f32[4,8], index: 0, kind: input, shape index: {}]   ;;  %s119_s1 = inlined_call_operand.vmem [shape: f32[32,1], index: 1, kind: output, shape index: {}]  }
   0x1   :  { %v5_v0 = vld [vmem:[%s118_s0] sm:$0xf]  ;;  %s66_s0 = smov 127   ;;  %s69_s12 = smov 124  }
   0x2   :  { %6 = vst [vmem:[#allocation0] sm:$0xf] %v5_v0  ;;  %s70_s13 = smov 123   ;;  %s71_s14 = smov 122  }
   0x3   :  { %s72_s15 = smov 121  }
   0x9   :  { %v10_v1 = vld [vmem:[#allocation0] sm:$0xf]  }
   0xa   :  { %v22_v2 = vld [vmem:[#allocation0] sm:$0xf]   ;;  %11 = vrot.lane.b32.xlu0 %v10_v1, %s66_s0 }
   0xb   :  { %23 = vrot.lane.b32.xlu1 %v22_v2, %s67_s8  ;;  %v16_v3 = vld [vmem:[#allocation0] sm:$0xf]  }
   0xc   :  { %v28_v4 = vld [vmem:[#allocation0] sm:$0xf]  }
   0xd   :  { %v7_v5 = vld [vmem:[#allocation0] sm:$0xf]  }
   0xe   :  { %9 = vst.msk [vmem:[%s119_s1] ss:$8 sm:$0xf] %vm8_vm0, %v7_v5   ;;  %17 = vrot.lane.b32.xlu0 %v16_v3, %s68_s11  ;;  %v34_v6 = vld [vmem:[#allocation0] sm:$0xf]  }
   0xf   :  { %29 = vrot.lane.b32.xlu1 %v28_v4, %s69_s12  ;;  %v40_v7 = vld [vmem:[#allocation0] sm:$0xf]  }
  0x10   :  { %v46_v8 = vld [vmem:[#allocation0] sm:$0xf]  }
  0x12   :  { %35 = vrot.lane.b32.xlu0 %v34_v6, %s70_s13 }
  0x13   :  { %41 = vrot.lane.b32.xlu1 %v40_v7, %s71_s14 }
  0x16   :  { %47 = vrot.lane.b32.xlu0 %v46_v8, %s72_s15 }
  0x7c   :  { %v12_v9 = vpop.permute.xlu0 %11  }
  0x7d   :  { %v24_v10 = vpop.permute.xlu1 %23   ;;  %52 = vst.msk [vmem:[%s119_s1 + $0x1] ss:$8 sm:$0xf] %vm8_vm0, %v12_v9  }
  0x7e   :  { %54 = vst.msk [vmem:[%s119_s1 + $0x3] ss:$8 sm:$0xf] %vm8_vm0, %v24_v10  }
  0x80   :  { %v18_v11 = vpop.permute.xlu0 %17  }
  0x81   :  { %v30_v12 = vpop.permute.xlu1 %29   ;;  %53 = vst.msk [vmem:[%s119_s1 + $0x2] ss:$8 sm:$0xf] %vm8_vm0, %v18_v11  }
  0x82   :  { %55 = vst.msk [vmem:[%s119_s1 + $0x4] ss:$8 sm:$0xf] %vm8_vm0, %v30_v12  }
  0x84   :  { %v36_v13 = vpop.permute.xlu0 %35  }
  0x85   :  { %v42_v14 = vpop.permute.xlu1 %41   ;;  %56 = vst.msk [vmem:[%s119_s1 + $0x5] ss:$8 sm:$0xf] %vm8_vm0, %v36_v13  }
  0x86   :  { %57 = vst.msk [vmem:[%s119_s1 + $0x6] ss:$8 sm:$0xf] %vm8_vm0, %v42_v14  }
  0x88   :  { %v48_v15 = vpop.permute.xlu0 %47  }
  0x89   :  { %58 = vst.msk [vmem:[%s119_s1 + $0x7] ss:$8 sm:$0xf] %vm8_vm0, %v48_v15  }

// kernel: trans_basic_conv2d.1
= control target key start
LH: loop header
LB: loop body
LE: loop exit
PB: predicated region body
PF: predicated region fallthrough
CT: control target
= control target key end

     0   :  { %s646_s12 = smov 0   ;;  %s648_s13 = smov 0   ;;  %s729_s0 = inlined_call_operand.vmem [shape: f32[2,4,256], index: 0, kind: input, shape index: {}]   ;;  %s730_s1 = inlined_call_operand.vmem [shape: f32[32,4], index: 1, kind: input, shape index: {}]   ;;  %s731_s2 = inlined_call_operand.vmem [shape: f32[32,1], index: 2, kind: input, shape index: {}]   ;;  %s732_s3 = inlined_call_operand.vmem [shape: f32[2,32,256], index: 3, kind: output, shape index: {}]  }
   0x1   :  { %s650_s14 = smov 0  }
   0x2 LB: > { %s25_s15 = sadd.s32 1, %s616_s13  ;;  %p551_p0 = scmp.ge.s32.totalorder %s620_s14, 1  ;;  %s620_s14 = sphi %s650_s14, %s13_s14   ;;  %s616_s13 = sphi %s648_s13, %s734_s13   ;;  %s612_s12 = sphi %s646_s12, %s733_s12  }
   0x3   : > { %p27_p1 = scmp.ge.s32.totalorder %s25_s15, 2  ;;  %p158_p2 = scmp.lt.s32.totalorder %s620_s14, 3 }
   0x5   : > { %s736_s15 = smov (%p27_p1, %s25_s15), 0  ;;  %p159_p3 = pnand %p551_p0, %p158_p2 }
   0x6   : > { %p191_p4 = scmp.lt.s32.totalorder (!%p159_p3), %s612_s12, 1 }
   0x7   : > { %162 = sbr.rel (%p159_p3) target bundleno = 191 (0xbf), region = 32 }
   0xc   : > { %v213_v0 = vld [vmem:[%s730_s1 + $0x10] sm:$0xff]  ;;  %v211_v1 = vld [vmem:[%s730_s1] sm:$0xff]  ;;  %v622_v2 = vmov 0   ;;  %v214_v3 = vld [vmem:[%s730_s1 + $0x18] sm:$0xff]  ;;  %v623_v5 = vmov 1   ;;  %v624_v6 = vmov 2   ;;  %v236_v16 = vlaneseq }
   0xd   : > { %589 = vset.pattern.permute.xlu1 %v622_v2  ;;  %588 = vset.pattern.permute.xlu0 %v622_v2  ;;  %v212_v4 = vld [vmem:[%s730_s1 + $0x8] sm:$0xff]  ;;  %v625_v7 = vmov 3   ;;  %v412_v9 = vld [vmem:[%s731_s2] sm:$0xff]  ;;  %v414_v10 = vld [vmem:[%s731_s2 + $0x10] sm:$0xff]  ;;  %s738_s12 = smov (!%p191_p4, %s612_s12), 1 }
   0xe   : > { %227 = vperm.xlu1 %589, %v213_v0   ;;  %217 = vperm.xlu0 %588, %v211_v1   ;;  %v413_v8 = vld [vmem:[%s731_s2 + $0x8] sm:$0xff]  ;;  %v415_v11 = vld [vmem:[%s731_s2 + $0x18] sm:$0xff]  ;;  %s558_s5 = sshll.u32 %s738_s12, 3  ;;  %v237_v19 = vshrl.u32 %v236_v16, 7  ;;  %s559_s9 = sshll.u32 %s738_s12, 6 }
   0xf   : > { %s198_s8 = scalar_lea.vmem %s729_s0, %s558_s5  ;;  %s710_s12 = scalar_lea.vmem %s732_s3, %s559_s9 }
  0x10   : > { %v280_v22 = vsub.s32 1, %v237_v19  ;;  %v284_v23 = vsub.s32 5, %v237_v19  ;;  %v238_v24 = vsub.s32 0, %v237_v19  ;;  %v242_v25 = vsub.s32 4, %v237_v19  ;;  %v210_v28 = vld [vmem:[%s198_s8] sm:$0xff] }
  0x11   : > { %v330_v26 = vsub.s32 2, %v237_v19  ;;  %v334_v27 = vsub.s32 6, %v237_v19  ;;  %v380_v37 = vsub.s32 3, %v237_v19  ;;  %v384_v38 = vsub.s32 7, %v237_v19 }
  0x12   : > { %232 = vperm.xlu1 %589, %v214_v3   ;;  %222 = vperm.xlu0 %588, %v212_v4   ;;  %v281_v29 = vrot.slane %v210_v28, %v280_v22  ;;  %v285_v30 = vrot.slane %v210_v28, %v284_v23  ;;  %v239_v33 = vrot.slane %v210_v28, %v238_v24 }
  0x13   : > { %v243_v34 = vrot.slane %v210_v28, %v242_v25  ;;  %v331_v35 = vrot.slane %v210_v28, %v330_v26  ;;  %v335_v36 = vrot.slane %v210_v28, %v334_v27  ;;  %v381_v47 = vrot.slane %v210_v28, %v380_v37 }
  0x14   : > { %v291_v39 = vrot.slane %v281_v29, %v280_v22  ;;  %v295_v40 = vrot.slane %v285_v30, %v280_v22  ;;  %v249_v43 = vrot.slane %v239_v33, %v238_v24  ;;  %v385_v48 = vrot.slane %v210_v28, %v384_v38 }
  0x15   : > { %v253_v44 = vrot.slane %v243_v34, %v238_v24  ;;  %v341_v45 = vrot.slane %v331_v35, %v330_v26  ;;  %v345_v46 = vrot.slane %v335_v36, %v330_v26  ;;  %v391_v63 = vrot.slane %v381_v47, %v380_v37 }
  0x16   : > { %591 = vset.pattern.permute.xlu1 %v623_v5  ;;  %590 = vset.pattern.permute.xlu0 %v623_v5 }
  0x17   : > { %267 = vperm.xlu1 %591, %v212_v4   ;;  %263 = vperm.xlu0 %590, %v211_v1  }
  0x1b   : > { %271 = vperm.xlu1 %591, %v213_v0   ;;  %275 = vperm.xlu0 %590, %v214_v3  }
  0x1f   : > { %592 = vset.pattern.permute.xlu1 %v624_v6  ;;  %593 = vset.pattern.permute.xlu0 %v624_v6 }
  0x20   : > { %313 = vperm.xlu1 %592, %v211_v1   ;;  %317 = vperm.xlu0 %593, %v212_v4  }
  0x24   : > { %321 = vperm.xlu1 %592, %v213_v0   ;;  %594 = vset.pattern.permute.xlu0 %v625_v7 }
  0x25   : > { %363 = vperm.xlu0 %594, %v211_v1  }
  0x28   : > { %325 = vperm.xlu1 %592, %v214_v3  }
  0x29   : > { %375 = vperm.xlu0 %594, %v214_v3  }
  0x2c   : > { %595 = vset.pattern.permute.xlu1 %v625_v7 }
  0x2d   : > { %367 = vperm.xlu1 %595, %v212_v4   ;;  %597 = vset.pattern.permute.xlu0 %v622_v2 }
  0x2e   : > { %423 = vperm.xlu0 %597, %v413_v8  }
  0x31   : > { %371 = vperm.xlu1 %595, %v213_v0   ;;  %v395_v0 = vrot.slane %v385_v48, %v380_v37 }
  0x35   : > { %596 = vset.pattern.permute.xlu1 %v622_v2 }
  0x36   : > { %418 = vperm.xlu1 %596, %v412_v9  }
  0x3a   : > { %428 = vperm.xlu1 %596, %v414_v10  }
  0x3e   : > { %433 = vperm.xlu1 %596, %v415_v11  }
  0x89   : > { %v228_v12 = vpop.permute.xlu1 %227  ;;  %v218_v13 = vpop.permute.xlu0 %217 }
  0x8a   : > { %v254_v56 = vmul.f32 %v249_v43, %v218_v13  ;;  %v255_v57 = vmul.f32 %v253_v44, %v218_v13  ;;  %v258_v1 = vmul.f32 %v249_v43, %v228_v12  ;;  %v259_v2 = vmul.f32 %v253_v44, %v228_v12 }
  0x8d   : > { %v691_v14 = vpop.permute.xlu1 %232  ;;  %v223_v15 = vpop.permute.xlu0 %222 }
  0x8e   : > { %v256_v49 = vmul.f32 %v249_v43, %v223_v15  ;;  %v257_v50 = vmul.f32 %v253_v44, %v223_v15 }
  0x92   : > { %v268_v17 = vpop.permute.xlu1 %267  ;;  %v264_v18 = vpop.permute.xlu0 %263 }
  0x93   : > { %v298_v51 = vmul.f32 %v291_v39, %v268_v17  ;;  %v299_v52 = vmul.f32 %v295_v40, %v268_v17  ;;  %v296_v58 = vmul.f32 %v291_v39, %v264_v18  ;;  %v297_v59 = vmul.f32 %v295_v40, %v264_v18 }
  0x94   : > { %v260_v17 = vmul.f32 %v249_v43, %v691_v14  ;;  %v261_v18 = vmul.f32 %v253_v44, %v691_v14 }
  0x95   : > { %v306_v61 = vadd.f32 %v298_v51, %v256_v49  ;;  %v307_v62 = vadd.f32 %v299_v52, %v257_v50  ;;  %v304_v10 = vadd.f32 %v296_v58, %v254_v56  ;;  %v305_v11 = vadd.f32 %v297_v59, %v255_v57 }
  0x96   : > { %v272_v20 = vpop.permute.xlu1 %271  ;;  %v697_v21 = vpop.permute.xlu0 %275 }
  0x97   : > { %v300_v3 = vmul.f32 %v291_v39, %v272_v20  ;;  %v301_v4 = vmul.f32 %v295_v40, %v272_v20  ;;  %v302_v12 = vmul.f32 %v291_v39, %v697_v21  ;;  %v303_v20 = vmul.f32 %v295_v40, %v697_v21 }
  0x99   : > { %v308_v26 = vadd.f32 %v300_v3, %v258_v1  ;;  %v309_v27 = vadd.f32 %v301_v4, %v259_v2  ;;  %v310_v40 = vadd.f32 %v302_v12, %v260_v17 }
  0x9b   : > { %v314_v31 = vpop.permute.xlu1 %313  ;;  %v318_v32 = vpop.permute.xlu0 %317 }
  0x9c   : > { %v348_v54 = vmul.f32 %v341_v45, %v318_v32  ;;  %v349_v55 = vmul.f32 %v345_v46, %v318_v32  ;;  %v346_v13 = vmul.f32 %v341_v45, %v314_v31  ;;  %v347_v15 = vmul.f32 %v345_v46, %v314_v31 }
  0x9e   : > { %v356_v6 = vadd.f32 %v348_v54, %v306_v61  ;;  %v357_v7 = vadd.f32 %v349_v55, %v307_v62  ;;  %v354_v30 = vadd.f32 %v346_v13, %v304_v10  ;;  %v355_v31 = vadd.f32 %v347_v15, %v305_v11 }
  0x9f   : > { %v322_v41 = vpop.permute.xlu1 %321 }
  0xa0   : > { %v364_v42 = vpop.permute.xlu0 %363  ;;  %v350_v32 = vmul.f32 %v341_v45, %v322_v41  ;;  %v351_v33 = vmul.f32 %v345_v46, %v322_v41 }
  0xa1   : > { %v396_v23 = vmul.f32 %v391_v63, %v364_v42  ;;  %v397_v24 = vmul.f32 %v395_v0, %v364_v42  ;;  %v311_v42 = vadd.f32 %v303_v20, %v261_v18 }
  0xa2   : > { %v358_v43 = vadd.f32 %v350_v32, %v308_v26  ;;  %v359_v44 = vadd.f32 %v351_v33, %v309_v27 }
  0xa3   : > { %v326_v53 = vpop.permute.xlu1 %325  ;;  %v404_v38 = vadd.f32 %v396_v23, %v354_v30  ;;  %v405_v39 = vadd.f32 %v397_v24, %v355_v31 }
  0xa4   : > { %v376_v60 = vpop.permute.xlu0 %375  ;;  %v352_v14 = vmul.f32 %v341_v45, %v326_v53  ;;  %v353_v21 = vmul.f32 %v345_v46, %v326_v53 }
  0xa5   : > { %v402_v46 = vmul.f32 %v391_v63, %v376_v60  ;;  %v403_v50 = vmul.f32 %v395_v0, %v376_v60 }
  0xa6   : > { %v360_v49 = vadd.f32 %v352_v14, %v310_v40  ;;  %v361_v45 = vadd.f32 %v353_v21, %v311_v42 }
  0xa8   : > { %v368_v5 = vpop.permute.xlu1 %367  ;;  %v410_v61 = vadd.f32 %v402_v46, %v360_v49  ;;  %v411_v62 = vadd.f32 %v403_v50, %v361_v45 }
  0xa9   : > { %v398_v8 = vmul.f32 %v391_v63, %v368_v5  ;;  %v399_v9 = vmul.f32 %v395_v0, %v368_v5  ;;  %v424_v16 = vpop.permute.xlu0 %423 }
  0xab   : > { %v406_v19 = vadd.f32 %v398_v8, %v356_v6  ;;  %v407_v22 = vadd.f32 %v399_v9, %v357_v7 }
  0xac   : > { %v372_v25 = vpop.permute.xlu1 %371 }
  0xad   : > { %v438_v28 = vadd.f32 %v424_v16, %v406_v19  ;;  %v439_v29 = vadd.f32 %v424_v16, %v407_v22  ;;  %v400_v36 = vmul.f32 %v391_v63, %v372_v25  ;;  %v401_v37 = vmul.f32 %v395_v0, %v372_v25 }
  0xaf   : > { %v446_v34 = vmax.f32 %v438_v28, 0.0  ;;  %v447_v35 = vmax.f32 %v439_v29, 0.0  ;;  %v408_v53 = vadd.f32 %v400_v36, %v358_v43  ;;  %v409_v54 = vadd.f32 %v401_v37, %v359_v44 }
  0xb1   : > { %454 = vst [vmem:[%s710_s12 + $0x10] sm:$0xff] %v446_v34  ;;  %455 = vst [vmem:[%s710_s12 + $0x18] sm:$0xff] %v447_v35  ;;  %v419_v41 = vpop.permute.xlu1 %418 }
  0xb2   : > { %v436_v47 = vadd.f32 %v419_v41, %v404_v38  ;;  %v437_v48 = vadd.f32 %v419_v41, %v405_v39 }
  0xb4   : > { %v444_v51 = vmax.f32 %v436_v47, 0.0  ;;  %v445_v52 = vmax.f32 %v437_v48, 0.0 }
  0xb5   : > { %v429_v55 = vpop.permute.xlu1 %428 }
  0xb6   : > { %452 = vst [vmem:[%s710_s12] sm:$0xff] %v444_v51  ;;  %453 = vst [vmem:[%s710_s12 + $0x8] sm:$0xff] %v445_v52  ;;  %v440_v56 = vadd.f32 %v429_v55, %v408_v53  ;;  %v441_v57 = vadd.f32 %v429_v55, %v409_v54 }
  0xb8   : > { %v448_v58 = vmax.f32 %v440_v56, 0.0  ;;  %v449_v59 = vmax.f32 %v441_v57, 0.0 }
  0xb9   : > { %v434_v1 = vpop.permute.xlu1 %433 }
  0xba   : > { %456 = vst [vmem:[%s710_s12 + $0x20] sm:$0xff] %v448_v58  ;;  %457 = vst [vmem:[%s710_s12 + $0x28] sm:$0xff] %v449_v59  ;;  %v442_v60 = vadd.f32 %v434_v1, %v410_v61  ;;  %v443_v63 = vadd.f32 %v434_v1, %v411_v62 }
  0xbc   : > { %v450_v0 = vmax.f32 %v442_v60, 0.0  ;;  %v451_v2 = vmax.f32 %v443_v63, 0.0 }
  0xbe   : > { %458 = vst [vmem:[%s710_s12 + $0x30] sm:$0xff] %v450_v0  ;;  %459 = vst [vmem:[%s710_s12 + $0x38] sm:$0xff] %v451_v2 }
  0xbf PF: > { %s13_s14 = sadd.s32 1, %s620_s14   ;;  %s733_s12 = smov %s616_s13 }
  0xc0   : > { %p10_p5 = scmp.ge.s32.totalorder %s13_s14, 4   ;;  %s734_s13 = smov %s736_s15 }
  0xc2   :  { %12 = sbr.rel (!%p10_p5) target bundleno = 2 (0x2), region = 62 }

</bundles_post_ra>
